<compile_context>
chip_gen: v7x
topology: tpu7x:2x2x1
jax: 0.10.0
libtpu: 0.0.40
codegen_flags: <defaults>
</compile_context>

<pallas_src>
import functools
import math

import jax
import jax.numpy as jnp
from jax.experimental import pallas as pl
from jax.experimental.pallas import tpu as pltpu


def _round_up(x, m):
    return ((x + m - 1) // m) * m


def _physical_vmem_bytes():
    try:
        return int(pltpu.get_tpu_info().vmem_capacity_bytes)
    except Exception:
        return 64 * 1024 * 1024  # conservative fallback (v7x per-TensorCore)


def _is_v5():
    try:
        return "v5" in jax.devices()[0].device_kind.lower()
    except Exception:
        return False


def _pad_feature_dim(d):
    """Lane-dim padding: multiples of 128; prefer 256 on v6e/v7x when cheap."""
    d128 = _round_up(d, 128)
    if d128 > 128 and not _is_v5():
        d256 = _round_up(d, 256)
        if d256 <= 1.25 * d128:
            return d256
    return d128


# ---------------------------------------------------------------------------
# Kernels
# ---------------------------------------------------------------------------
def _make_agg_project_kernel(tk, x_resident):
    """out[i] = ((sum_k adj[i,k] @ feat[k]) @ W) + bias  (reassociated order)."""
    align = tk & (-tk)  # largest power-of-two divisor of tk (>= 128)

    def kernel(adj_ref, x_ref, w_ref, b_ref, out_ref, acc_ref):
        k = pl.program_id(1)

        @pl.when(k == 0)
        def _init():
            acc_ref[...] = jnp.zeros_like(acc_ref)

        if x_resident:
            x = x_ref[pl.ds(pl.multiple_of(k * tk, align), tk), :]
        else:
            x = x_ref[...]
        acc_ref[...] += jnp.dot(adj_ref[...], x,
                                preferred_element_type=jnp.float32)

        @pl.when(k == pl.num_programs(1) - 1)
        def _finalize():
            proj = jnp.dot(acc_ref[...].astype(jnp.bfloat16), w_ref[...],
                           preferred_element_type=jnp.float32)
            out_ref[...] = (proj + b_ref[...]).astype(out_ref.dtype)

    return kernel


def _make_agg_bias_kernel(tk, x_resident):
    """out[i] = (sum_k adj[i,k] @ support[k]) + bias, accumulated into out_ref."""
    align = tk & (-tk)

    def kernel(adj_ref, x_ref, b_ref, out_ref):
        k = pl.program_id(1)

        @pl.when(k == 0)
        def _init():
            out_ref[...] = jnp.broadcast_to(b_ref[...], out_ref.shape)

        if x_resident:
            x = x_ref[pl.ds(pl.multiple_of(k * tk, align), tk), :]
        else:
            x = x_ref[...]
        out_ref[...] += jnp.dot(adj_ref[...], x,
                                preferred_element_type=jnp.float32)

    return kernel


def _project_kernel(x_ref, w_ref, out_ref):
    """Row-tiled support = features @ W (only when F_out < F_in)."""
    out_ref[...] = jnp.dot(x_ref[...], w_ref[...],
                           preferred_element_type=jnp.float32
                           ).astype(out_ref.dtype)


def _project_support(feat_p, w_p, vmem_limit):
    n_rows_p, f_in_p = feat_p.shape
    f_out_p = w_p.shape[1]
    pt = max(p for p in (512, 256, 128) if n_rows_p % p == 0)
    return pl.pallas_call(
        _project_kernel,
        out_shape=jax.ShapeDtypeStruct((n_rows_p, f_out_p), jnp.bfloat16),
        grid_spec=pltpu.PrefetchScalarGridSpec(
            num_scalar_prefetch=0,
            grid=(n_rows_p // pt,),
            in_specs=[
                pl.BlockSpec((pt, f_in_p), lambda i: (i, 0)),
                pl.BlockSpec((f_in_p, f_out_p), lambda i: (0, 0)),
            ],
            out_specs=pl.BlockSpec((pt, f_out_p), lambda i: (i, 0)),
        ),
        compiler_params=pltpu.CompilerParams(
            dimension_semantics=("parallel",),
            vmem_limit_bytes=vmem_limit),
    )(feat_p, w_p)


# ---------------------------------------------------------------------------
# Tile selection (static, per call signature)
# ---------------------------------------------------------------------------
def _select_tiles(n, d_pad, f_in_p, f_out_p, reassociate, row_tile, k_tile,
                  budget):
    n_128 = _round_up(n, 128)
    tm = min(_round_up(row_tile, 128), n_128)
    tk = min(_round_up(k_tile, 128), n_128)

    # Megacore (v7x has 2 TCs): prefer >= 2 row tiles so "parallel" splits.
    if _round_up(n, tm) // tm < 2 and n_128 >= 256:
        tm = max(128, (n_128 // 2) // 128 * 128)

    def footprint(tm_, tk_, x_res):
        n_cols_ = _round_up(n, tk_)
        x_rows = n_cols_ if x_res else tk_
        b = 2 * tm_ * tk_ * 2               # adj tiles, double-buffered bf16
        b += 2 * x_rows * d_pad * 2         # feat / support, bf16
        b += 2 * tm_ * f_out_p * 4          # fp32 output block
        b += 2 * f_out_p * 4                # bias
        if reassociate:
            b += 2 * f_in_p * f_out_p * 2   # resident bf16 W
            b += tm_ * f_in_p * 4           # fp32 accumulator scratch
        return b

    x_resident = True
    while footprint(tm, tk, x_resident) > budget:
        n_cols = _round_up(n, tk)
        x_bytes = 2 * (n_cols if x_resident else tk) * d_pad * 2
        adj_bytes = 2 * tm * tk * 2
        if x_resident and x_bytes >= adj_bytes:
            x_resident = False
        elif tk > 512:
            tk = max(512, (tk // 2) // 128 * 128)
        elif tm > 128:
            tm = max(128, (tm // 2) // 128 * 128)
        elif tk > 128:
            tk = max(128, (tk // 2) // 128 * 128)
        elif x_resident:
            x_resident = False
        else:
            break
    return tm, tk, x_resident, footprint(tm, tk, x_resident)


# ---------------------------------------------------------------------------
# Forward wrapper (jitted so pad/cast fuse into one HBM pass)
# ---------------------------------------------------------------------------
@functools.partial(jax.jit, static_argnames=("row_tile", "k_tile"))
def gcn_forward(features, adj, weight, bias=None, *, row_tile=512, k_tile=2048):
    """GCN forward: adj @ (features @ weight) + bias, as tiled Pallas kernels."""
    n, f_in = features.shape
    f_out = weight.shape[1]

    f_in_p = _pad_feature_dim(f_in)
    f_out_p = _pad_feature_dim(f_out)

    # Association order: big NxN contraction runs on the smaller feature dim.
    reassociate = f_in <= f_out
    d_pad = f_in_p if reassociate else f_out_p

    phys_vmem = _physical_vmem_bytes()
    budget = int(phys_vmem * 0.75)          # ~48 MiB v7x, ~96 MiB v5e/v6e
    tm, tk, x_resident, fp_bytes = _select_tiles(
        n, d_pad, f_in_p, f_out_p, reassociate, row_tile, k_tile, budget)

    n_rows = _round_up(n, tm)
    n_cols = _round_up(n, tk)

    vmem_limit = min(int(phys_vmem * 0.9),
                     max(32 * 1024 * 1024, int(1.3 * fp_bytes)))

    # Pad + bf16 cast fuse into a single pass under jit; these are no-ops if the
    # caller already supplies bf16 / padded operands reused across GCN layers.
    adj_p = jnp.pad(adj.astype(jnp.bfloat16),
                    ((0, n_rows - n), (0, n_cols - n)))
    feat_p = jnp.pad(features.astype(jnp.bfloat16),
                     ((0, n_cols - n), (0, f_in_p - f_in)))
    w_p = jnp.pad(weight.astype(jnp.bfloat16),
                  ((0, f_in_p - f_in), (0, f_out_p - f_out)))
    if bias is None:
        b_p = jnp.zeros((1, f_out_p), jnp.float32)
    else:
        b_p = jnp.pad(bias.astype(jnp.float32).reshape(1, f_out),
                      ((0, 0), (0, f_out_p - f_out)))

    if reassociate:
        x_p = feat_p                                   # (adj @ feat) @ W + b
    else:
        x_p = _project_support(feat_p, w_p, vmem_limit)  # adj @ (feat @ W) + b

    grid = (n_rows // tm, n_cols // tk)

    flops = 2 * n_rows * n_cols * d_pad
    flops += 2 * (n_rows if reassociate else n_cols) * f_in_p * f_out_p
    cost = pl.CostEstimate(
        flops=flops, transcendentals=0,
        bytes_accessed=(adj_p.size * 2 + x_p.size * 2 + w_p.size * 2
                        + b_p.size * 4 + n_rows * f_out_p * 4))

    adj_spec = pl.BlockSpec((tm, tk), lambda i, k: (i, k))
    if x_resident:
        # Whole feature/support matrix stays resident in VMEM; sliced in-kernel.
        x_spec = pl.BlockSpec((n_cols, d_pad), lambda i, k: (0, 0))
    else:
        x_spec = pl.BlockSpec((tk, d_pad), lambda i, k: (k, 0))
    w_spec = pl.BlockSpec((f_in_p, f_out_p), lambda i, k: (0, 0))
    b_spec = pl.BlockSpec((1, f_out_p), lambda i, k: (0, 0))
    out_spec = pl.BlockSpec((tm, f_out_p), lambda i, k: (i, 0))
    cparams = pltpu.CompilerParams(
        dimension_semantics=("parallel", "arbitrary"),
        vmem_limit_bytes=vmem_limit)
    out_shape = jax.ShapeDtypeStruct((n_rows, f_out_p), jnp.float32)

    if reassociate:
        out_p = pl.pallas_call(
            _make_agg_project_kernel(tk, x_resident),
            out_shape=out_shape,
            grid_spec=pltpu.PrefetchScalarGridSpec(
                num_scalar_prefetch=0,
                grid=grid,
                in_specs=[adj_spec, x_spec, w_spec, b_spec],
                out_specs=out_spec,
                scratch_shapes=[pltpu.VMEM((tm, f_in_p), jnp.float32)]),
            compiler_params=cparams,
            cost_estimate=cost,
        )(adj_p, x_p, w_p, b_p)
    else:
        out_p = pl.pallas_call(
            _make_agg_bias_kernel(tk, x_resident),
            out_shape=out_shape,
            grid_spec=pltpu.PrefetchScalarGridSpec(
                num_scalar_prefetch=0,
                grid=grid,
                in_specs=[adj_spec, x_spec, b_spec],
                out_specs=out_spec),
            compiler_params=cparams,
            cost_estimate=cost,
        )(adj_p, x_p, b_p)

    return out_p[:n, :f_out]


def init_params(key, nfeatures_in, nfeatures_out):
    # Matches the module's effective init on the xavier path:
    # weight ~ xavier_normal_(gain=0.02), bias = 0.
    std = 0.02 * math.sqrt(2.0 / (nfeatures_in + nfeatures_out))
    weight = std * jax.random.normal(key, (nfeatures_in, nfeatures_out),
                                     dtype=jnp.float32)
    bias = jnp.zeros((nfeatures_out,), dtype=jnp.float32)
    return weight, bias


if __name__ == "__main__":
    key = jax.random.PRNGKey(0)

    # Exercise both association orders and a non-128-aligned / multi-tile case.
    cases = [(128, 32, 64), (128, 64, 32), (384, 48, 96), (384, 96, 48)]
    for (N, F_IN, F_OUT) in cases:
        k_feat, k_adj, k_w, k_b, key = jax.random.split(key, 5)

        features = jax.random.normal(k_feat, (N, F_IN), dtype=jnp.float32)
        # Simple symmetric row-normalized dense adjacency, deterministic.
        raw = jax.random.uniform(k_adj, (N, N), dtype=jnp.float32)
        adj = (raw + raw.T) * 0.5
        adj = adj / jnp.sum(adj, axis=1, keepdims=True)

        weight, _ = init_params(k_w, F_IN, F_OUT)
        bias = 0.01 * jax.random.normal(k_b, (F_OUT,), dtype=jnp.float32)

        out = gcn_forward(features, adj, weight, bias)
        out = jax.block_until_ready(out)

        # Plain-JAX fp32 reference (original association order).
        ref = adj @ (features @ weight) + bias[None, :]
        assert out.shape == (N, F_OUT)
        # bf16 MXU inputs with fp32 accumulation -> loose-but-meaningful tol.
        assert jnp.allclose(out, ref, rtol=2e-2, atol=1e-3), (
            "max abs err = %g" % float(jnp.max(jnp.abs(out - ref))))

    print("KERNEL_OK")
</pallas_src>

<mosaic_0001>
module attributes {stable_mosaic.version = 11 : i64} {
  func.func @kernel(%arg0: i32, %arg1: i32, %arg2: memref<128x128xbf16, #tpu.memory_space<vmem>>, %arg3: memref<128x128xbf16, #tpu.memory_space<vmem>>, %arg4: memref<128x128xbf16, #tpu.memory_space<vmem>>, %arg5: memref<1x128xf32, #tpu.memory_space<vmem>>, %arg6: memref<128x128xf32, #tpu.memory_space<vmem>>, %arg7: memref<128x128xf32, #tpu.memory_space<vmem>>) attributes {dimension_semantics = [#tpu.dimension_semantics<parallel>, #tpu.dimension_semantics<arbitrary>], iteration_bounds = array<i64: 1, 1>, scalar_prefetch = 0 : i64, scratch_operands = 1 : i64, tpu.core_type = #tpu.core_type<tc>, window_params = [{transform_indices = @transform_0, window_bounds = array<i64: 128, 128>}, {pipeline_mode = #tpu.pipeline_mode<synchronous>, transform_indices = @transform_1, window_bounds = array<i64: 128, 128>}, {pipeline_mode = #tpu.pipeline_mode<synchronous>, transform_indices = @transform_2, window_bounds = array<i64: 128, 128>}, {pipeline_mode = #tpu.pipeline_mode<synchronous>, transform_indices = @transform_3, window_bounds = array<i64: 1, 128>}, {transform_indices = @transform_4, window_bounds = array<i64: 128, 128>}]} {
    %c0_i32 = arith.constant 0 : i32
    %0 = arith.cmpi eq, %arg1, %c0_i32 : i32
    %1 = arith.extui %0 : i1 to i32
    %c0_i32_0 = arith.constant 0 : i32
    %2 = arith.cmpi ne, %1, %c0_i32_0 : i32
    scf.if %2 {
      %cst_9 = arith.constant 0.000000e+00 : f32
      %15 = vector.broadcast %cst_9 : f32 to vector<128x128xf32>
      %c0_10 = arith.constant 0 : index
      %c0_11 = arith.constant 0 : index
      %16 = vector.load %arg7[%c0_10, %c0_11] : memref<128x128xf32, #tpu.memory_space<vmem>>, vector<128x128xf32>
      tpu.vector_store %arg7[%c0_10, %c0_11], %15 {strides = array<i32>} : memref<128x128xf32, #tpu.memory_space<vmem>>, vector<128x128xf32>,
    } else {
    }
    %c128_i32 = arith.constant 128 : i32
    %3 = arith.muli %arg1, %c128_i32 : i32
    %4 = tpu.assume_multiple %3, 128 : i32
    %5 = arith.index_cast %4 : i32 to index
    %c0 = arith.constant 0 : index
    %6 = vector.load %arg3[%5, %c0] : memref<128x128xbf16, #tpu.memory_space<vmem>>, vector<128x128xbf16>
    %c0_1 = arith.constant 0 : index
    %c0_2 = arith.constant 0 : index
    %7 = vector.load %arg7[%c0_1, %c0_2] : memref<128x128xf32, #tpu.memory_space<vmem>>, vector<128x128xf32>
    %c0_3 = arith.constant 0 : index
    %c0_4 = arith.constant 0 : index
    %8 = vector.load %arg2[%c0_3, %c0_4] : memref<128x128xbf16, #tpu.memory_space<vmem>>, vector<128x128xbf16>
    %cst = arith.constant dense<0.000000e+00> : vector<128x128xf32>
    %9 = tpu.matmul %8, %6, %cst {dimension_numbers = #tpu.dot_dimension_numbers<[1], [0], [0], [1], [0, 0, 1, 1], [], []>} : vector<128x128xbf16>, vector<128x128xbf16>, vector<128x128xf32> -> vector<128x128xf32>
    %10 = arith.addf %7, %9 : vector<128x128xf32>
    %c0_5 = arith.constant 0 : index
    %c0_6 = arith.constant 0 : index
    %11 = vector.load %arg7[%c0_5, %c0_6] : memref<128x128xf32, #tpu.memory_space<vmem>>, vector<128x128xf32>
    tpu.vector_store %arg7[%c0_5, %c0_6], %10 {strides = array<i32>} : memref<128x128xf32, #tpu.memory_space<vmem>>, vector<128x128xf32>,
    %c0_i32_7 = arith.constant 0 : i32
    %12 = arith.cmpi eq, %arg1, %c0_i32_7 : i32
    %13 = arith.extui %12 : i1 to i32
    %c0_i32_8 = arith.constant 0 : i32
    %14 = arith.cmpi ne, %13, %c0_i32_8 : i32
    scf.if %14 {
      %c0_9 = arith.constant 0 : index
      %c0_10 = arith.constant 0 : index
      %15 = vector.load %arg7[%c0_9, %c0_10] : memref<128x128xf32, #tpu.memory_space<vmem>>, vector<128x128xf32>
      %16 = arith.truncf %15 : vector<128x128xf32> to vector<128x128xbf16>
      %c0_11 = arith.constant 0 : index
      %c0_12 = arith.constant 0 : index
      %17 = vector.load %arg4[%c0_11, %c0_12] : memref<128x128xbf16, #tpu.memory_space<vmem>>, vector<128x128xbf16>
      %cst_13 = arith.constant dense<0.000000e+00> : vector<128x128xf32>
      %18 = tpu.matmul %16, %17, %cst_13 {dimension_numbers = #tpu.dot_dimension_numbers<[1], [0], [0], [1], [0, 0, 1, 1], [], []>} : vector<128x128xbf16>, vector<128x128xbf16>, vector<128x128xf32> -> vector<128x128xf32>
      %c0_14 = arith.constant 0 : index
      %c0_15 = arith.constant 0 : index
      %19 = vector.load %arg5[%c0_14, %c0_15] : memref<1x128xf32, #tpu.memory_space<vmem>>, vector<1x128xf32>
      %20 = vector.broadcast %19 : vector<1x128xf32> to vector<128x128xf32>
      %21 = arith.addf %18, %20 : vector<128x128xf32>
      %c0_16 = arith.constant 0 : index
      %c0_17 = arith.constant 0 : index
      %22 = vector.load %arg6[%c0_16, %c0_17] : memref<128x128xf32, #tpu.memory_space<vmem>>, vector<128x128xf32>
      tpu.vector_store %arg6[%c0_16, %c0_17], %21 {strides = array<i32>} : memref<128x128xf32, #tpu.memory_space<vmem>>, vector<128x128xf32>,
    } else {
    }
    return
  }
  func.func @transform_0(%arg0: i32, %arg1: i32) -> (i32, i32) {
    %c0_i32 = arith.constant 0 : i32
    return %arg0, %arg1 : i32, i32
  }
  func.func @transform_1(%arg0: i32, %arg1: i32) -> (i32, i32) {
    %c0_i32 = arith.constant 0 : i32
    %c0_i32_0 = arith.constant 0 : i32
    %c0_i32_1 = arith.constant 0 : i32
    return %c0_i32, %c0_i32_0 : i32, i32
  }
  func.func @transform_2(%arg0: i32, %arg1: i32) -> (i32, i32) {
    %c0_i32 = arith.constant 0 : i32
    %c0_i32_0 = arith.constant 0 : i32
    %c0_i32_1 = arith.constant 0 : i32
    return %c0_i32, %c0_i32_0 : i32, i32
  }
  func.func @transform_3(%arg0: i32, %arg1: i32) -> (i32, i32) {
    %c0_i32 = arith.constant 0 : i32
    %c0_i32_0 = arith.constant 0 : i32
    %c0_i32_1 = arith.constant 0 : i32
    return %c0_i32, %c0_i32_0 : i32, i32
  }
  func.func @transform_4(%arg0: i32, %arg1: i32) -> (i32, i32) {
    %c0_i32 = arith.constant 0 : i32
    %c0_i32_0 = arith.constant 0 : i32
    return %arg0, %c0_i32 : i32, i32
  }
}

</mosaic_0001>

<bundles_post_ra>
// kernel: gcn_forward.1
= control target key start
LH: loop header
LB: loop body
LE: loop exit
PB: predicated region body
PF: predicated region fallthrough
CT: control target
= control target key end

     0   :  { %s826_s1 = inlined_call_operand.vmem [shape: bf16[128,128], index: 1, kind: input, shape index: {}]   ;;  %s827_s0 = inlined_call_operand.vmem [shape: bf16[128,128], index: 0, kind: input, shape index: {}]   ;;  %s828_s2 = inlined_call_operand.vmem [shape: bf16[128,128], index: 2, kind: input, shape index: {}]   ;;  %s829_s3 = inlined_call_operand.vmem [shape: f32[1,128], index: 3, kind: input, shape index: {}]   ;;  %s830_s4 = inlined_call_operand.vmem [shape: f32[128,128], index: 4, kind: output, shape index: {}]  }
   0x1   :  { %v654_v0 = vld [vmem:[%s826_s1] sm:$0xff]   ;;  %v655_v1 = vld [vmem:[%s826_s1 + $0x8] sm:$0xff]   ;;  %v656_v2 = vld [vmem:[%s826_s1 + $0x10] sm:$0xff]  }
   0x2   :  { %590 = vmatprep.subr.bf16.mxu0 %v654_v0  ;;  %v657_v3 = vld [vmem:[%s826_s1 + $0x18] sm:$0xff]   ;;  %v662_v4 = vld [vmem:[%s827_s0] sm:$0xff]   ;;  %v659_v6 = vld [vmem:[%s826_s1 + $0x28] sm:$0xff]  }
   0x3   :  { %591 = vmatpush3.bf16.msra.mxu0 %v654_v0  ;;  %606 = vmatprep.mubr.bf16.mxu0 %v662_v4  ;;  %v658_v5 = vld [vmem:[%s826_s1 + $0x20] sm:$0xff]   ;;  %v671_v8 = vld [vmem:[%s828_s2 + $0x8] sm:$0xff]   ;;  %v660_v9 = vld [vmem:[%s826_s1 + $0x30] sm:$0xff]  }
   0x4   :  { %592 = vmatprep.subr.bf16.mxu0 %v655_v1  ;;  %v670_v7 = vld [vmem:[%s828_s2] sm:$0xff]   ;;  %v672_v10 = vld [vmem:[%s828_s2 + $0x10] sm:$0xff]   ;;  %v661_v11 = vld [vmem:[%s826_s1 + $0x38] sm:$0xff]  }
   0x5   :  { %622 = vmatprep.subr.bf16.mxu1 %v670_v7  ;;  %v673_v12 = vld [vmem:[%s828_s2 + $0x18] sm:$0xff]   ;;  %v674_v13 = vld [vmem:[%s828_s2 + $0x20] sm:$0xff]   ;;  %v663_v14 = vld [vmem:[%s827_s0 + $0x8] sm:$0xff]  }
   0x6   :  { %623 = vmatpush3.bf16.msra.mxu1 %v670_v7  ;;  %v664_v15 = vld [vmem:[%s827_s0 + $0x10] sm:$0xff]   ;;  %v675_v16 = vld [vmem:[%s828_s2 + $0x28] sm:$0xff]   ;;  %v665_v18 = vld [vmem:[%s827_s0 + $0x18] sm:$0xff]  }
   0x7   :  { %593 = vmatpush3.bf16.msra.mxu0 %v655_v1  ;;  %624 = vmatprep.subr.bf16.mxu1 %v671_v8  ;;  %v676_v17 = vld [vmem:[%s828_s2 + $0x30] sm:$0xff]   ;;  %v666_v19 = vld [vmem:[%s827_s0 + $0x20] sm:$0xff]   ;;  %v667_v20 = vld [vmem:[%s827_s0 + $0x28] sm:$0xff]  }
   0x8   :  { %594 = vmatprep.subr.bf16.mxu0 %v656_v2  ;;  %v668_v21 = vld [vmem:[%s827_s0 + $0x30] sm:$0xff]   ;;  %v669_v22 = vld [vmem:[%s827_s0 + $0x38] sm:$0xff]   ;;  %v549_v48 = vld [vmem:[%s829_s3] ss:$0 sm:$0xff] }
   0x9   :  { %v677_v23 = vld [vmem:[%s828_s2 + $0x38] sm:$0xff]  }
   0xa   :  { %625 = vmatpush3.bf16.msra.mxu1 %v671_v8 }
   0xb   :  { %595 = vmatpush3.bf16.msra.mxu0 %v656_v2  ;;  %626 = vmatprep.subr.bf16.mxu1 %v672_v10 }
   0xc   :  { %596 = vmatprep.subr.bf16.mxu0 %v657_v3 }
   0xe   :  { %627 = vmatpush3.bf16.msra.mxu1 %v672_v10 }
   0xf   :  { %597 = vmatpush3.bf16.msra.mxu0 %v657_v3  ;;  %628 = vmatprep.subr.bf16.mxu1 %v673_v12 }
  0x10   :  { %598 = vmatprep.subr.bf16.mxu0 %v658_v5 }
  0x12   :  { %629 = vmatpush3.bf16.msra.mxu1 %v673_v12 }
  0x13   :  { %599 = vmatpush3.bf16.msra.mxu0 %v658_v5  ;;  %630 = vmatprep.subr.bf16.mxu1 %v674_v13 }
  0x14   :  { %600 = vmatprep.subr.bf16.mxu0 %v659_v6 }
  0x16   :  { %631 = vmatpush3.bf16.msra.mxu1 %v674_v13 }
  0x17   :  { %601 = vmatpush3.bf16.msra.mxu0 %v659_v6  ;;  %632 = vmatprep.subr.bf16.mxu1 %v675_v16 }
  0x18   :  { %602 = vmatprep.subr.bf16.mxu0 %v660_v9 }
  0x1a   :  { %633 = vmatpush3.bf16.msra.mxu1 %v675_v16 }
  0x1b   :  { %603 = vmatpush3.bf16.msra.mxu0 %v660_v9  ;;  %634 = vmatprep.subr.bf16.mxu1 %v676_v17 }
  0x1c   :  { %604 = vmatprep.subr.bf16.mxu0 %v661_v11 }
  0x1e   :  { %635 = vmatpush3.bf16.msra.mxu1 %v676_v17 }
  0x1f   :  { %605 = vmatpush3.bf16.msra.mxu0 %v661_v11  ;;  %636 = vmatprep.subr.bf16.mxu1 %v677_v23 }
  0x22   :  { %607 = vmatmul.mubr.bf16.vlgmr.msra.gmra.mrb[0].mxu0 %v663_v14  ;;  %637 = vmatpush3.bf16.msra.mxu1 %v677_v23 }
  0x23   :  { %610 = vmatprep.mubr.bf16.mxu0 %v664_v15 }
  0x2a   :  { %611 = vmatmul.mubr.bf16.gmra.mrb[4].mxu0 %v665_v18 }
  0x2b   :  { %614 = vmatprep.mubr.bf16.mxu0 %v666_v19 }
  0x32   :  { %615 = vmatmul.mubr.bf16.gmra.mrb[8].mxu0 %v667_v20 }
  0x33   :  { %618 = vmatprep.mubr.bf16.mxu0 %v668_v21 }
  0x3a   :  { %619 = vmatmul.mubr.bf16.gmra.mrb[12].mxu0 %v669_v22 }
  0xf5   :  { %v608_v24 = vpop.f32.mrb[0].mxu0 }
  0xf6   :  { %v221_v25 = vpop.f32.mrb[1].mxu0 }
  0xf7   :  { %v609_v26 = vpop.f32.mrb[2].mxu0 }
  0xf8   :  { %v336_v27 = vpack.c.bf16 %v609_v26, %v608_v24  ;;  %v224_v28 = vpop.f32.mrb[3].mxu0 }
  0xf9   :  { %v335_v29 = vpack.c.bf16 %v224_v28, %v221_v25 }
  0xfb   :  { %638 = vmatprep.mubr.bf16.mxu1 %v335_v29 }
  0xfc   :  { %639 = vmatmul.mubr.bf16.vlgmr.msra.gmra.mrb[0].mxu1 %v336_v27 }
  0xfd   :  { %v612_v30 = vpop.f32.mrb[4].mxu0 }
  0xfe   :  { %v237_v31 = vpop.f32.mrb[5].mxu0 }
  0xff   :  { %v613_v32 = vpop.f32.mrb[6].mxu0 }
 0x100   :  { %v338_v33 = vpack.c.bf16 %v613_v32, %v612_v30  ;;  %v240_v34 = vpop.f32.mrb[7].mxu0 }
 0x101   :  { %v337_v35 = vpack.c.bf16 %v240_v34, %v237_v31 }
 0x103   :  { %642 = vmatprep.mubr.bf16.mxu1 %v337_v35 }
 0x104   :  { %643 = vmatmul.mubr.bf16.gmra.mrb[4].mxu1 %v338_v33 }
 0x105   :  { %v616_v36 = vpop.f32.mrb[8].mxu0 }
 0x106   :  { %v253_v37 = vpop.f32.mrb[9].mxu0 }
 0x107   :  { %v617_v38 = vpop.f32.mrb[10].mxu0 }
 0x108   :  { %v340_v39 = vpack.c.bf16 %v617_v38, %v616_v36  ;;  %v256_v40 = vpop.f32.mrb[11].mxu0 }
 0x109   :  { %v339_v41 = vpack.c.bf16 %v256_v40, %v253_v37 }
 0x10b   :  { %646 = vmatprep.mubr.bf16.mxu1 %v339_v41 }
 0x10c   :  { %647 = vmatmul.mubr.bf16.gmra.mrb[8].mxu1 %v340_v39 }
 0x10d   :  { %v620_v42 = vpop.f32.mrb[12].mxu0 }
 0x10e   :  { %v269_v43 = vpop.f32.mrb[13].mxu0 }
 0x10f   :  { %v621_v44 = vpop.f32.mrb[14].mxu0 }
 0x110   :  { %v342_v45 = vpack.c.bf16 %v621_v44, %v620_v42  ;;  %v272_v46 = vpop.f32.mrb[15].mxu0 }
 0x111   :  { %v341_v47 = vpack.c.bf16 %v272_v46, %v269_v43 }
 0x113   :  { %650 = vmatprep.mubr.bf16.mxu1 %v341_v47 }
 0x114   :  { %651 = vmatmul.mubr.bf16.gmra.mrb[12].mxu1 %v342_v45 }
 0x1cf   :  { %v640_v49 = vpop.f32.mrb[0].mxu1 }
 0x1d0   :  { %v457_v50 = vadd.f32 %v640_v49, %v549_v48  ;;  %v448_v51 = vpop.f32.mrb[1].mxu1 }
 0x1d1   :  { %v449_v52 = vadd.f32 %v549_v48, %v448_v51  ;;  %v641_v53 = vpop.f32.mrb[2].mxu1 }
 0x1d2   :  { %513 = vst [vmem:[%s830_s4 + $0x10] sm:$0xff] %v457_v50  ;;  %v460_v54 = vadd.f32 %v641_v53, %v549_v48  ;;  %v451_v55 = vpop.f32.mrb[3].mxu1 }
 0x1d3   :  { %511 = vst [vmem:[%s830_s4] sm:$0xff] %v449_v52  ;;  %v452_v56 = vadd.f32 %v549_v48, %v451_v55 }
 0x1d4   :  { %514 = vst [vmem:[%s830_s4 + $0x18] sm:$0xff] %v460_v54 }
 0x1d5   :  { %512 = vst [vmem:[%s830_s4 + $0x8] sm:$0xff] %v452_v56 }
 0x1d7   :  { %v644_v57 = vpop.f32.mrb[4].mxu1 }
 0x1d8   :  { %v473_v58 = vadd.f32 %v644_v57, %v549_v48  ;;  %v464_v59 = vpop.f32.mrb[5].mxu1 }
 0x1d9   :  { %v465_v60 = vadd.f32 %v549_v48, %v464_v59  ;;  %v645_v61 = vpop.f32.mrb[6].mxu1 }
 0x1da   :  { %517 = vst [vmem:[%s830_s4 + $0x30] sm:$0xff] %v473_v58  ;;  %v476_v62 = vadd.f32 %v645_v61, %v549_v48  ;;  %v467_v63 = vpop.f32.mrb[7].mxu1 }
 0x1db   :  { %515 = vst [vmem:[%s830_s4 + $0x20] sm:$0xff] %v465_v60  ;;  %v468_v0 = vadd.f32 %v549_v48, %v467_v63 }
 0x1dc   :  { %518 = vst [vmem:[%s830_s4 + $0x38] sm:$0xff] %v476_v62 }
 0x1dd   :  { %516 = vst [vmem:[%s830_s4 + $0x28] sm:$0xff] %v468_v0 }
 0x1df   :  { %v648_v1 = vpop.f32.mrb[8].mxu1 }
 0x1e0   :  { %v489_v2 = vadd.f32 %v648_v1, %v549_v48  ;;  %v480_v3 = vpop.f32.mrb[9].mxu1 }
 0x1e1   :  { %v481_v4 = vadd.f32 %v549_v48, %v480_v3  ;;  %v649_v5 = vpop.f32.mrb[10].mxu1 }
 0x1e2   :  { %521 = vst [vmem:[%s830_s4 + $0x50] sm:$0xff] %v489_v2  ;;  %v492_v6 = vadd.f32 %v649_v5, %v549_v48  ;;  %v483_v7 = vpop.f32.mrb[11].mxu1 }
 0x1e3   :  { %519 = vst [vmem:[%s830_s4 + $0x40] sm:$0xff] %v481_v4  ;;  %v484_v8 = vadd.f32 %v549_v48, %v483_v7 }
 0x1e4   :  { %522 = vst [vmem:[%s830_s4 + $0x58] sm:$0xff] %v492_v6 }
 0x1e5   :  { %520 = vst [vmem:[%s830_s4 + $0x48] sm:$0xff] %v484_v8 }
 0x1e7   :  { %v652_v9 = vpop.f32.mrb[12].mxu1 }
 0x1e8   :  { %v505_v10 = vadd.f32 %v652_v9, %v549_v48  ;;  %v496_v11 = vpop.f32.mrb[13].mxu1 }
 0x1e9   :  { %v497_v12 = vadd.f32 %v549_v48, %v496_v11  ;;  %v653_v13 = vpop.f32.mrb[14].mxu1 }
 0x1ea   :  { %525 = vst [vmem:[%s830_s4 + $0x70] sm:$0xff] %v505_v10  ;;  %v508_v14 = vadd.f32 %v653_v13, %v549_v48  ;;  %v499_v15 = vpop.f32.mrb[15].mxu1 }
 0x1eb   :  { %523 = vst [vmem:[%s830_s4 + $0x60] sm:$0xff] %v497_v12  ;;  %v500_v16 = vadd.f32 %v549_v48, %v499_v15 }
 0x1ec   :  { %526 = vst [vmem:[%s830_s4 + $0x78] sm:$0xff] %v508_v14 }
 0x1ed   :  { %524 = vst [vmem:[%s830_s4 + $0x68] sm:$0xff] %v500_v16 }

</bundles_post_ra>
